<compile_context>
chip_gen: v7x
topology: tpu7x:2x2x1
jax: 0.10.0
libtpu: 0.0.40
codegen_flags: <defaults>
</compile_context>

<pallas_src>
import functools

import jax
import jax.numpy as jnp
from jax.experimental import pallas as pl
from jax.experimental.pallas import tpu as pltpu

LANE = 128
SUBLANE = 8


def _round_up(n, m):
    return ((n + m - 1) // m) * m


def net_kernel(x_ref, w1_ref, b1_ref, w2_ref, b2_ref, o_ref):
    # fc1: Linear + ReLU (MXU matmul, f32 accumulate; ReLU/bias on VPU).
    h = jnp.dot(x_ref[...], w1_ref[...], preferred_element_type=jnp.float32)
    h = jnp.maximum(h + b1_ref[...], 0.0)
    # fc2: Linear into a lane-dense (TB, 128) padded logits tile.
    out = jnp.dot(h, w2_ref[...], preferred_element_type=jnp.float32)
    o_ref[...] = (out + b2_ref[...]).astype(o_ref.dtype)


@functools.partial(jax.jit, static_argnames=("tb",))
def net_forward(x, w1, b1, w2, b2, *, tb=512):
    """Batched forward pass. x: (B, K). Returns (B, out_dim) f32 logits."""
    B, K = x.shape
    H = w1.shape[1]
    out_dim = w2.shape[1]

    # --- Lane-dense logits: pad the output feature dim to a multiple of 128.
    out_pad = _round_up(max(out_dim, LANE), LANE)
    w2p = jnp.zeros((H, out_pad), w2.dtype).at[:, :out_dim].set(w2)
    b2p = jnp.zeros((1, out_pad), b2.dtype).at[:, :out_dim].set(b2)
    b1r = b1.reshape(1, H)

    # --- Batch tiling: grid over rows; pad B up to a multiple of the tile.
    tb_eff = min(_round_up(tb, SUBLANE), _round_up(B, SUBLANE))
    B_pad = _round_up(B, tb_eff)
    if B_pad != B:
        x = jnp.pad(x, ((0, B_pad - B), (0, 0)))

    grid = (B_pad // tb_eff,)

    cost = pl.CostEstimate(
        flops=2 * B_pad * (K * H + H * out_pad),
        transcendentals=0,
        bytes_accessed=4 * (B_pad * K + K * H + H + H * out_pad + out_pad
                            + B_pad * out_pad),
    )

    out = pl.pallas_call(
        net_kernel,
        out_shape=jax.ShapeDtypeStruct((B_pad, out_pad), jnp.float32),
        grid=grid,
        in_specs=[
            # x: one row-tile per grid step (double-buffered by Pallas).
            pl.BlockSpec((tb_eff, K), lambda i: (i, 0)),
            # Weights / biases: same block every step -> VMEM-resident.
            pl.BlockSpec((K, H), lambda i: (0, 0)),
            pl.BlockSpec((1, H), lambda i: (0, 0)),
            pl.BlockSpec((H, out_pad), lambda i: (0, 0)),
            pl.BlockSpec((1, out_pad), lambda i: (0, 0)),
        ],
        out_specs=pl.BlockSpec((tb_eff, out_pad), lambda i: (i, 0)),
        compiler_params=pltpu.CompilerParams(
            dimension_semantics=("parallel",),
        ),
        cost_estimate=cost,
    )(x, w1, b1r, w2p, b2p)

    return out[:B, :out_dim]


def init_params(key, input_size, hidden, out_dim=4):
    # Deterministic synthetic init (matches PyTorch's default uniform
    # fan_in init for nn.Linear in distribution).
    k1, k2, k3, k4 = jax.random.split(key, 4)
    bound1 = 1.0 / jnp.sqrt(input_size)
    bound2 = 1.0 / jnp.sqrt(hidden)
    w1 = jax.random.uniform(k1, (input_size, hidden), jnp.float32, -bound1, bound1)
    b1 = jax.random.uniform(k2, (1, hidden), jnp.float32, -bound1, bound1)
    w2 = jax.random.uniform(k3, (hidden, out_dim), jnp.float32, -bound2, bound2)
    b2 = jax.random.uniform(k4, (1, out_dim), jnp.float32, -bound2, bound2)
    return w1, b1, w2, b2


if __name__ == "__main__":
    # Small shapes consistent with the module: Net(input_size=16, hidden=128)
    # (hidden=128 is the nn.Module default), batch of 8 state vectors.
    B, input_size, hidden = 8, 16, 128

    key = jax.random.PRNGKey(0)
    kx, kp = jax.random.split(key)
    x = jax.random.normal(kx, (B, input_size), jnp.float32)
    w1, b1, w2, b2 = init_params(kp, input_size, hidden)

    out = net_forward(x, w1, b1, w2, b2)
    jax.block_until_ready(out)

    ref = jnp.maximum(x @ w1 + b1, 0.0) @ w2 + b2
    assert out.shape == (B, 4)
    assert jnp.allclose(out, ref, atol=1e-4, rtol=1e-4)

    # Exercise the batch-grid + row-padding path (grid > 1, B not a multiple
    # of the tile) — the regime the optimizations target.
    B2 = 300
    x2 = jax.random.normal(jax.random.PRNGKey(1), (B2, input_size), jnp.float32)
    out2 = net_forward(x2, w1, b1, w2, b2, tb=256)
    jax.block_until_ready(out2)
    ref2 = jnp.maximum(x2 @ w1 + b1, 0.0) @ w2 + b2
    assert out2.shape == (B2, 4)
    assert jnp.allclose(out2, ref2, atol=1e-4, rtol=1e-4)

    print("KERNEL_OK")
</pallas_src>

<mosaic_0001>
module attributes {stable_mosaic.version = 11 : i64} {
  func.func @net_kernel(%arg0: i32, %arg1: memref<8x16xf32, #tpu.memory_space<vmem>>, %arg2: memref<16x128xf32, #tpu.memory_space<vmem>>, %arg3: memref<1x128xf32, #tpu.memory_space<vmem>>, %arg4: memref<128x128xf32, #tpu.memory_space<vmem>>, %arg5: memref<1x128xf32, #tpu.memory_space<vmem>>, %arg6: memref<8x128xf32, #tpu.memory_space<vmem>>) attributes {dimension_semantics = [#tpu.dimension_semantics<parallel>], iteration_bounds = array<i64: 1>, scalar_prefetch = 0 : i64, scratch_operands = 0 : i64, tpu.core_type = #tpu.core_type<tc>, window_params = [{transform_indices = @transform_0, window_bounds = array<i64: 8, 16>}, {pipeline_mode = #tpu.pipeline_mode<synchronous>, transform_indices = @transform_1, window_bounds = array<i64: 16, 128>}, {pipeline_mode = #tpu.pipeline_mode<synchronous>, transform_indices = @transform_2, window_bounds = array<i64: 1, 128>}, {pipeline_mode = #tpu.pipeline_mode<synchronous>, transform_indices = @transform_3, window_bounds = array<i64: 128, 128>}, {pipeline_mode = #tpu.pipeline_mode<synchronous>, transform_indices = @transform_4, window_bounds = array<i64: 1, 128>}, {transform_indices = @transform_5, window_bounds = array<i64: 8, 128>}]} {
    %c0 = arith.constant 0 : index
    %c0_0 = arith.constant 0 : index
    %0 = vector.load %arg1[%c0, %c0_0] : memref<8x16xf32, #tpu.memory_space<vmem>>, vector<8x16xf32>
    %c0_1 = arith.constant 0 : index
    %c0_2 = arith.constant 0 : index
    %1 = vector.load %arg2[%c0_1, %c0_2] : memref<16x128xf32, #tpu.memory_space<vmem>>, vector<16x128xf32>
    %cst = arith.constant dense<0.000000e+00> : vector<8x128xf32>
    %2 = tpu.matmul %0, %1, %cst {dimension_numbers = #tpu.dot_dimension_numbers<[1], [0], [0], [1], [0, 0, 1, 1], [], []>} : vector<8x16xf32>, vector<16x128xf32>, vector<8x128xf32> -> vector<8x128xf32>
    %c0_3 = arith.constant 0 : index
    %c0_4 = arith.constant 0 : index
    %3 = vector.load %arg3[%c0_3, %c0_4] : memref<1x128xf32, #tpu.memory_space<vmem>>, vector<1x128xf32>
    %4 = vector.broadcast %3 : vector<1x128xf32> to vector<8x128xf32>
    %5 = arith.addf %2, %4 : vector<8x128xf32>
    %cst_5 = arith.constant 0.000000e+00 : f32
    %6 = vector.broadcast %cst_5 : f32 to vector<8x128xf32>
    %7 = arith.maximumf %5, %6 : vector<8x128xf32>
    %c0_6 = arith.constant 0 : index
    %c0_7 = arith.constant 0 : index
    %8 = vector.load %arg4[%c0_6, %c0_7] : memref<128x128xf32, #tpu.memory_space<vmem>>, vector<128x128xf32>
    %cst_8 = arith.constant dense<0.000000e+00> : vector<8x128xf32>
    %9 = tpu.matmul %7, %8, %cst_8 {dimension_numbers = #tpu.dot_dimension_numbers<[1], [0], [0], [1], [0, 0, 1, 1], [], []>} : vector<8x128xf32>, vector<128x128xf32>, vector<8x128xf32> -> vector<8x128xf32>
    %c0_9 = arith.constant 0 : index
    %c0_10 = arith.constant 0 : index
    %10 = vector.load %arg5[%c0_9, %c0_10] : memref<1x128xf32, #tpu.memory_space<vmem>>, vector<1x128xf32>
    %11 = vector.broadcast %10 : vector<1x128xf32> to vector<8x128xf32>
    %12 = arith.addf %9, %11 : vector<8x128xf32>
    %c0_11 = arith.constant 0 : index
    %c0_12 = arith.constant 0 : index
    %13 = vector.load %arg6[%c0_11, %c0_12] : memref<8x128xf32, #tpu.memory_space<vmem>>, vector<8x128xf32>
    tpu.vector_store %arg6[%c0_11, %c0_12], %12 {strides = array<i32>} : memref<8x128xf32, #tpu.memory_space<vmem>>, vector<8x128xf32>,
    return
  }
  func.func @transform_0(%arg0: i32) -> (i32, i32) {
    %c0_i32 = arith.constant 0 : i32
    %c0_i32_0 = arith.constant 0 : i32
    return %arg0, %c0_i32 : i32, i32
  }
  func.func @transform_1(%arg0: i32) -> (i32, i32) {
    %c0_i32 = arith.constant 0 : i32
    %c0_i32_0 = arith.constant 0 : i32
    %c0_i32_1 = arith.constant 0 : i32
    return %c0_i32, %c0_i32_0 : i32, i32
  }
  func.func @transform_2(%arg0: i32) -> (i32, i32) {
    %c0_i32 = arith.constant 0 : i32
    %c0_i32_0 = arith.constant 0 : i32
    %c0_i32_1 = arith.constant 0 : i32
    return %c0_i32, %c0_i32_0 : i32, i32
  }
  func.func @transform_3(%arg0: i32) -> (i32, i32) {
    %c0_i32 = arith.constant 0 : i32
    %c0_i32_0 = arith.constant 0 : i32
    %c0_i32_1 = arith.constant 0 : i32
    return %c0_i32, %c0_i32_0 : i32, i32
  }
  func.func @transform_4(%arg0: i32) -> (i32, i32) {
    %c0_i32 = arith.constant 0 : i32
    %c0_i32_0 = arith.constant 0 : i32
    %c0_i32_1 = arith.constant 0 : i32
    return %c0_i32, %c0_i32_0 : i32, i32
  }
  func.func @transform_5(%arg0: i32) -> (i32, i32) {
    %c0_i32 = arith.constant 0 : i32
    %c0_i32_0 = arith.constant 0 : i32
    return %arg0, %c0_i32 : i32, i32
  }
}

</mosaic_0001>

<bundles_post_ra>
// kernel: net_forward.1
= control target key start
LH: loop header
LB: loop body
LE: loop exit
PB: predicated region body
PF: predicated region fallthrough
CT: control target
= control target key end

     0   :  { %v298_v0 = vmov 0.0|0.0   ;;  %vm299_vm0 = vmmov 0   ;;  %v300_v3 = vmov 0.0   ;;  %vm30_vm1 = vcmask 130048   ;;  %s397_s1 = inlined_call_operand.vmem [shape: f32[16,128], index: 1, kind: input, shape index: {}]   ;;  %s398_s3 = inlined_call_operand.vmem [shape: f32[128,128], index: 3, kind: input, shape index: {}]   ;;  %s399_s0 = inlined_call_operand.vmem [shape: f32[8,16], index: 0, kind: input, shape index: {}]   ;;  %s400_s2 = inlined_call_operand.vmem [shape: f32[1,128], index: 2, kind: input, shape index: {}]   ;;  %s401_s4 = inlined_call_operand.vmem [shape: f32[1,128], index: 4, kind: input, shape index: {}]   ;;  %s402_s5 = inlined_call_operand.vmem [shape: f32[8,128], index: 5, kind: output, shape index: {}]  }
   0x1   :  { %268 = vmatprep.subr.bf16.mxu0 %v298_v0  ;;  %v21_v1 = vld [vmem:[%s397_s1] sm:$0xff]  ;;  %v22_v2 = vld [vmem:[%s397_s1 + $0x8] sm:$0xff]  ;;  %230 = vmatprep.mubr.msk.f32.mxu0 %vm299_vm0, %v300_v3  ;;  %v107_v7 = vld [vmem:[%s398_s3 + $0x10] sm:$0xff] }
   0x2   :  { %v269_v4 = vpack.c.bf16 %v22_v2, %v21_v1  ;;  %271 = vmatprep.subr.bf16.mxu1 %v298_v0  ;;  %v105_v5 = vld [vmem:[%s398_s3] sm:$0xff]  ;;  %v106_v6 = vld [vmem:[%s398_s3 + $0x8] sm:$0xff]  ;;  %265 = vmatprep.mubr.msk.f32.mxu1 %vm299_vm0, %v300_v3  ;;  %v108_v9 = vld [vmem:[%s398_s3 + $0x18] sm:$0xff] }
   0x3   :  { %v272_v8 = vpack.c.bf16 %v106_v6, %v105_v5  ;;  %v20_v10 = vld [vmem:[%s399_s0] sm:$0xff]  ;;  %v275_v11 = vpack.c.bf16 %v108_v9, %v107_v7  ;;  %v110_v13 = vld [vmem:[%s398_s3 + $0x28] sm:$0xff]  ;;  %v111_v15 = vld [vmem:[%s398_s3 + $0x30] sm:$0xff] }
   0x4   :  { %270 = vmatpush3.bf16.msra.mxu0 %v269_v4  ;;  %v109_v12 = vld [vmem:[%s398_s3 + $0x20] sm:$0xff]  ;;  %v112_v16 = vld [vmem:[%s398_s3 + $0x38] sm:$0xff]  ;;  %v114_v19 = vld [vmem:[%s398_s3 + $0x48] sm:$0xff] }
   0x5   :  { %273 = vmatpush3.bf16.msra.mxu1 %v272_v8  ;;  %v278_v14 = vpack.c.bf16 %v110_v13, %v109_v12  ;;  %v281_v17 = vpack.c.bf16 %v112_v16, %v111_v15  ;;  %v113_v18 = vld [vmem:[%s398_s3 + $0x40] sm:$0xff]  ;;  %v115_v21 = vld [vmem:[%s398_s3 + $0x50] sm:$0xff]  ;;  %v116_v22 = vld [vmem:[%s398_s3 + $0x58] sm:$0xff] }
   0x6   :  { %274 = vmatprep.subr.bf16.mxu1 %v298_v0  ;;  %v284_v20 = vpack.c.bf16 %v114_v19, %v113_v18  ;;  %v287_v23 = vpack.c.bf16 %v116_v22, %v115_v21  ;;  %v117_v24 = vld [vmem:[%s398_s3 + $0x60] sm:$0xff]  ;;  %v118_v25 = vld [vmem:[%s398_s3 + $0x68] sm:$0xff]  ;;  %v119_v27 = vld [vmem:[%s398_s3 + $0x70] sm:$0xff] }
   0x7   :  { %231 = vmatmul.mubr.msk.f32.vlgmr.msra.gmra.mrb[0].mxu0 %vm30_vm1, %v20_v10  ;;  %v290_v26 = vpack.c.bf16 %v118_v25, %v117_v24  ;;  %v120_v28 = vld [vmem:[%s398_s3 + $0x78] sm:$0xff]  ;;  %v203_v30 = vld [vmem:[%s400_s2] ss:$0 sm:$0xff] }
   0x8   :  { %v293_v29 = vpack.c.bf16 %v120_v28, %v119_v27  ;;  %v205_v35 = vld [vmem:[%s401_s4] ss:$0 sm:$0xff] }
   0x9   :  { %276 = vmatpush3.bf16.msra.mxu1 %v275_v11 }
   0xa   :  { %277 = vmatprep.subr.bf16.mxu1 %v298_v0 }
   0xd   :  { %279 = vmatpush3.bf16.msra.mxu1 %v278_v14 }
   0xe   :  { %280 = vmatprep.subr.bf16.mxu1 %v298_v0 }
  0x11   :  { %282 = vmatpush3.bf16.msra.mxu1 %v281_v17 }
  0x12   :  { %283 = vmatprep.subr.bf16.mxu1 %v298_v0 }
  0x15   :  { %285 = vmatpush3.bf16.msra.mxu1 %v284_v20 }
  0x16   :  { %286 = vmatprep.subr.bf16.mxu1 %v298_v0 }
  0x19   :  { %288 = vmatpush3.bf16.msra.mxu1 %v287_v23 }
  0x1a   :  { %289 = vmatprep.subr.bf16.mxu1 %v298_v0 }
  0x1d   :  { %291 = vmatpush3.bf16.msra.mxu1 %v290_v26 }
  0x1e   :  { %292 = vmatprep.subr.bf16.mxu1 %v298_v0 }
  0x21   :  { %294 = vmatpush3.bf16.msra.mxu1 %v293_v29 }
  0xda   :  { %v100_v31 = vpop.f32.mrb[0].mxu0 }
  0xdb   :  { %v101_v32 = vadd.f32 %v203_v30, %v100_v31  ;;  %v232_v33 = vpop.f32.mrb[1].mxu0 }
  0xdd   :  { %v104_v34 = vmax.f32 %v101_v32, 0.0 }
  0xdf   :  { %266 = vmatmul.mubr.f32.vlgmr.msra.gmra.mrb[0].mxu1 %v104_v34 }
 0x1b2   :  { %v194_v36 = vpop.f32.mrb[0].mxu1 }
 0x1b3   :  { %v195_v37 = vadd.f32 %v205_v35, %v194_v36  ;;  %v267_v38 = vpop.f32.mrb[1].mxu1 }
 0x1b5   :  { %198 = vst [vmem:[%s402_s5] sm:$0xff] %v195_v37 }

</bundles_post_ra>
